<compile_context>
chip_gen: v7x
topology: tpu7x:2x2x1
jax: 0.10.0
libtpu: 0.0.40
codegen_flags: <defaults>
</compile_context>

<pallas_src>
import functools

import jax
import jax.numpy as jnp
import numpy as np
from jax import lax
from jax.experimental import pallas as pl
from jax.experimental.pallas import tpu as pltpu


def decoder_layer_kernel(x_ref, ln1_g_ref, ln1_b_ref,
                         wqt_ref, wkt_ref, wvt_ref,
                         projt_ref, projb_ref,
                         ln2_g_ref, ln2_b_ref,
                         w1t_ref, b1_ref, w2t_ref, b2_ref,
                         out_ref, *, num_heads):
    T, C = x_ref.shape
    hs = C // num_heads
    eps = 1e-5
    bf16 = jnp.bfloat16

    def layernorm(v, g_ref, b_ref):
        # Single-pass stats in f32: one sweep computes E[x] and E[x^2].
        mu = jnp.mean(v, axis=-1, keepdims=True)
        mu2 = jnp.mean(v * v, axis=-1, keepdims=True)
        var = mu2 - mu * mu
        return (v - mu) * lax.rsqrt(var + eps) * g_ref[...] + b_ref[...]

    # ---- self-attention branch (pre-LN) ----
    xn = layernorm(x_ref[...].astype(jnp.float32), ln1_g_ref, ln1_b_ref).astype(bf16)

    q2 = jnp.dot(xn, wqt_ref[...], preferred_element_type=jnp.float32)   # (T, C) f32
    k2 = jnp.dot(xn, wkt_ref[...], preferred_element_type=jnp.float32)
    v2 = jnp.dot(xn, wvt_ref[...], preferred_element_type=jnp.float32)

    def split_heads(a):
        # (T, C) f32 -> (H, T, hs) f32 via one fused reshape+transpose (no per-head
        # lane slices / stack).  Cast to bf16 afterwards (pure VPU).
        return jnp.swapaxes(a.reshape(T, num_heads, hs), 0, 1)

    q3 = split_heads(q2).astype(bf16)
    k3 = split_heads(k2).astype(bf16)
    v3 = split_heads(v2).astype(bf16)

    # Batched over heads: one dot_general for QK^T, one for PV.
    # NOTE: reference scales by num_embed**-0.5 (not head_size**-0.5) — intentional.
    s = jnp.einsum("htd,hsd->hts", q3, k3,
                   preferred_element_type=jnp.float32) * (C ** -0.5)      # (H, T, T) f32

    rows = lax.broadcasted_iota(jnp.int32, (T, T), 0)
    cols = lax.broadcasted_iota(jnp.int32, (T, T), 1)
    s = jnp.where((cols <= rows)[None, :, :], s, jnp.float32(-1e30))      # finite fill

    s = s - jnp.max(s, axis=-1, keepdims=True)
    p = jnp.exp(s)
    p = p * pl.reciprocal(jnp.sum(p, axis=-1, keepdims=True), approx=True)  # EUP slot
    # TODO(synk): nn.Dropout on attention weights / proj / FFN hidden is identity here
    # (inference); a train-mode variant would mask with pltpu.prng_random_bits.

    o = jnp.einsum("hts,hsd->htd", p.astype(bf16), v3,
                   preferred_element_type=jnp.float32)                     # (H, T, hs)
    sa = jnp.swapaxes(o, 0, 1).reshape(T, C)                               # merge heads
    sa = jnp.dot(sa.astype(bf16), projt_ref[...],
                 preferred_element_type=jnp.float32) + projb_ref[...]

    # Re-read x at the residual add (x_ref is VMEM-resident; keeps its live range short).
    x1 = x_ref[...].astype(jnp.float32) + sa

    # ---- feed-forward branch (pre-LN) ----
    xn2 = layernorm(x1, ln2_g_ref, ln2_b_ref).astype(bf16)
    h1 = jnp.dot(xn2, w1t_ref[...], preferred_element_type=jnp.float32) + b1_ref[...]
    h1 = jnp.maximum(h1, 0.0).astype(bf16)
    ff = jnp.dot(h1, w2t_ref[...], preferred_element_type=jnp.float32) + b2_ref[...]
    # TODO(synk): stream w1t/w2t over the inner dim (fori_loop K-chunks or grid axis)
    # for large C so the FFN weights/hidden are not fully VMEM-resident.

    out_ref[...] = (x1 + ff).astype(out_ref.dtype)


def _vmem_limit_bytes(T, C, inner, num_heads):
    """Corrected VMEM accounting: x2 only for BlockSpec-pipelined buffers."""
    bf16, f32 = 2, 4
    x_blk = f32 * T * C                                   # input block (f32)
    out_blk = bf16 * T * C                                # output block (bf16)
    weights = bf16 * (4 * C * C + 2 * C * inner)          # wq, wk, wv, proj, w1, w2
    smalls = f32 * (6 * C + inner)                        # ln params + biases
    pipelined = 2 * (x_blk + out_blk + weights + smalls)  # default double-buffering
    # Kernel-internal temporaries (single copy, rough peak-liveness upper bound).
    acts = (f32 * (4 * T * C + 2 * num_heads * T * T + T * inner)
            + bf16 * (4 * T * C + num_heads * T * T + T * inner))
    need = pipelined + acts + (4 << 20)                   # compiler-scratch margin
    try:
        # 64 MiB per TC on v7x, 128 MiB on v5e/v6e.
        vmem_cap = pltpu.get_tpu_info().vmem_capacity_bytes
    except Exception:  # narrow guard: only the HW query — never masks kernel errors
        vmem_cap = 64 << 20
    cap = vmem_cap - (12 << 20)                           # leave headroom for XLA
    return int(max(32 << 20, min(cap, need)))


def decoder_layer(x, params, *, num_heads, out_dtype=jnp.bfloat16):
    B, T, C = x.shape
    inner = params["w1t"].shape[1]

    bf16 = jnp.bfloat16
    wq, wk, wv, projt, w1t, w2t = (
        params[k].astype(bf16) for k in ("wqt", "wkt", "wvt", "projt", "w1t", "w2t"))

    def wspec(shape):
        # Constant block across the B grid (fetched once by the pipeline).
        return pl.BlockSpec(shape, lambda b: (0, 0))

    kernel = functools.partial(decoder_layer_kernel, num_heads=num_heads)
    return pl.pallas_call(
        kernel,
        out_shape=jax.ShapeDtypeStruct((B, T, C), out_dtype),
        grid_spec=pltpu.PrefetchScalarGridSpec(
            num_scalar_prefetch=0,
            grid=(B,),
            in_specs=[
                pl.BlockSpec((None, T, C), lambda b: (b, 0, 0)),  # x (batch squeezed)
                wspec((1, C)),            # ln1 gamma
                wspec((1, C)),            # ln1 beta
                wspec((C, C)),            # Wq^T (stacked heads)
                wspec((C, C)),            # Wk^T
                wspec((C, C)),            # Wv^T
                wspec((C, C)),            # proj W^T
                wspec((1, C)),            # proj bias
                wspec((1, C)),            # ln2 gamma
                wspec((1, C)),            # ln2 beta
                wspec((C, inner)),        # ffn W1^T
                wspec((1, inner)),        # ffn b1
                wspec((inner, C)),        # ffn W2^T
                wspec((1, C)),            # ffn b2
            ],
            out_specs=pl.BlockSpec((None, T, C), lambda b: (b, 0, 0)),
        ),
        compiler_params=pltpu.CompilerParams(
            dimension_semantics=("parallel",),
            vmem_limit_bytes=_vmem_limit_bytes(T, C, inner, num_heads),
        ),
    )(x.astype(jnp.float32), params["ln1_g"], params["ln1_b"],
      wq, wk, wv,
      projt, params["projb"],
      params["ln2_g"], params["ln2_b"],
      w1t, params["b1"], w2t, params["b2"])


def reference_decoder_layer(x, params, *, num_heads):
    """Pure-JAX f32 reference matching the PyTorch forward (dropout = identity)."""
    B, T, C = x.shape
    hs = C // num_heads
    eps = 1e-5

    def ln(v, g, b):
        mu = jnp.mean(v, axis=-1, keepdims=True)
        var = jnp.mean((v - mu) ** 2, axis=-1, keepdims=True)
        return (v - mu) / jnp.sqrt(var + eps) * g + b

    xn = ln(x, params["ln1_g"][0], params["ln1_b"][0])
    q = xn @ params["wqt"]
    k = xn @ params["wkt"]
    v = xn @ params["wvt"]
    scale = C ** (-0.5)
    mask = jnp.tril(jnp.ones((T, T), bool))
    outs = []
    for h in range(num_heads):
        qs, ks, vs = (a[..., h * hs:(h + 1) * hs] for a in (q, k, v))
        wei = jnp.einsum("btd,bsd->bts", qs, ks) * scale
        wei = jnp.where(mask, wei, -jnp.inf)
        wei = jax.nn.softmax(wei, axis=-1)
        outs.append(jnp.einsum("bts,bsd->btd", wei, vs))
    sa = jnp.concatenate(outs, axis=-1) @ params["projt"] + params["projb"][0]
    x1 = x + sa
    xn2 = ln(x1, params["ln2_g"][0], params["ln2_b"][0])
    ff = jax.nn.relu(xn2 @ params["w1t"] + params["b1"][0]) @ params["w2t"] + params["b2"][0]
    return x1 + ff


def init_params(key, num_embed, num_heads):
    inner = 4 * num_embed
    ks = jax.random.split(key, 8)
    s = 0.02
    return {
        "ln1_g": jnp.ones((1, num_embed), jnp.float32),
        "ln1_b": jnp.zeros((1, num_embed), jnp.float32),
        "wqt": s * jax.random.normal(ks[0], (num_embed, num_embed), jnp.float32),
        "wkt": s * jax.random.normal(ks[1], (num_embed, num_embed), jnp.float32),
        "wvt": s * jax.random.normal(ks[2], (num_embed, num_embed), jnp.float32),
        "projt": s * jax.random.normal(ks[3], (num_embed, num_embed), jnp.float32),
        "projb": s * jax.random.normal(ks[4], (1, num_embed), jnp.float32),
        "ln2_g": jnp.ones((1, num_embed), jnp.float32),
        "ln2_b": jnp.zeros((1, num_embed), jnp.float32),
        "w1t": s * jax.random.normal(ks[5], (num_embed, inner), jnp.float32),
        "b1": jnp.zeros((1, inner), jnp.float32),
        "w2t": s * jax.random.normal(ks[6], (inner, num_embed), jnp.float32),
        "b2": jnp.zeros((1, num_embed), jnp.float32),
    }


if __name__ == "__main__":
    # NOTE: tiny test shape; real workloads should use C (and ideally T) as multiples
    # of 128 / 8 so stores are lane-dense and the MXU isn't mostly padding.
    B, T, C, H = 2, 8, 32, 4   # batch, block_size (seq), num_embed, num_heads
    key = jax.random.PRNGKey(0)
    kx, kp = jax.random.split(key)
    x = jax.random.normal(kx, (B, T, C), jnp.float32)
    params = init_params(kp, C, H)

    out = decoder_layer(x, params, num_heads=H)
    out = jax.block_until_ready(out)

    ref = reference_decoder_layer(x, params, num_heads=H)
    # bf16 weights/activations/output with f32 accumulation: bf16-level tolerance.
    np.testing.assert_allclose(np.asarray(out).astype(np.float32), np.asarray(ref),
                               rtol=3e-2, atol=3e-2)

    print("KERNEL_OK")
</pallas_src>

<mosaic_0001>
module attributes {stable_mosaic.version = 11 : i64} {
  func.func @decoder_layer_kernel(%arg0: i32, %arg1: memref<1x8x32xf32, #tpu.memory_space<vmem>>, %arg2: memref<1x32xf32, #tpu.memory_space<vmem>>, %arg3: memref<1x32xf32, #tpu.memory_space<vmem>>, %arg4: memref<32x32xbf16, #tpu.memory_space<vmem>>, %arg5: memref<32x32xbf16, #tpu.memory_space<vmem>>, %arg6: memref<32x32xbf16, #tpu.memory_space<vmem>>, %arg7: memref<32x32xbf16, #tpu.memory_space<vmem>>, %arg8: memref<1x32xf32, #tpu.memory_space<vmem>>, %arg9: memref<1x32xf32, #tpu.memory_space<vmem>>, %arg10: memref<1x32xf32, #tpu.memory_space<vmem>>, %arg11: memref<32x128xbf16, #tpu.memory_space<vmem>>, %arg12: memref<1x128xf32, #tpu.memory_space<vmem>>, %arg13: memref<128x32xbf16, #tpu.memory_space<vmem>>, %arg14: memref<1x32xf32, #tpu.memory_space<vmem>>, %arg15: memref<1x8x32xbf16, #tpu.memory_space<vmem>>) attributes {dimension_semantics = [#tpu.dimension_semantics<parallel>], iteration_bounds = array<i64: 2>, scalar_prefetch = 0 : i64, scratch_operands = 0 : i64, tpu.core_type = #tpu.core_type<tc>, window_params = [{transform_indices = @transform_0, window_bounds = array<i64: 1, 8, 32>}, {pipeline_mode = #tpu.pipeline_mode<synchronous>, transform_indices = @transform_1, window_bounds = array<i64: 1, 32>}, {pipeline_mode = #tpu.pipeline_mode<synchronous>, transform_indices = @transform_2, window_bounds = array<i64: 1, 32>}, {pipeline_mode = #tpu.pipeline_mode<synchronous>, transform_indices = @transform_3, window_bounds = array<i64: 32, 32>}, {pipeline_mode = #tpu.pipeline_mode<synchronous>, transform_indices = @transform_4, window_bounds = array<i64: 32, 32>}, {pipeline_mode = #tpu.pipeline_mode<synchronous>, transform_indices = @transform_5, window_bounds = array<i64: 32, 32>}, {pipeline_mode = #tpu.pipeline_mode<synchronous>, transform_indices = @transform_6, window_bounds = array<i64: 32, 32>}, {pipeline_mode = #tpu.pipeline_mode<synchronous>, transform_indices = @transform_7, window_bounds = array<i64: 1, 32>}, {pipeline_mode = #tpu.pipeline_mode<synchronous>, transform_indices = @transform_8, window_bounds = array<i64: 1, 32>}, {pipeline_mode = #tpu.pipeline_mode<synchronous>, transform_indices = @transform_9, window_bounds = array<i64: 1, 32>}, {pipeline_mode = #tpu.pipeline_mode<synchronous>, transform_indices = @transform_10, window_bounds = array<i64: 32, 128>}, {pipeline_mode = #tpu.pipeline_mode<synchronous>, transform_indices = @transform_11, window_bounds = array<i64: 1, 128>}, {pipeline_mode = #tpu.pipeline_mode<synchronous>, transform_indices = @transform_12, window_bounds = array<i64: 128, 32>}, {pipeline_mode = #tpu.pipeline_mode<synchronous>, transform_indices = @transform_13, window_bounds = array<i64: 1, 32>}, {transform_indices = @transform_14, window_bounds = array<i64: 1, 8, 32>}]} {
    %c0 = arith.constant 0 : index
    %c0_0 = arith.constant 0 : index
    %c0_1 = arith.constant 0 : index
    %0 = vector.load %arg1[%c0, %c0_0, %c0_1] : memref<1x8x32xf32, #tpu.memory_space<vmem>>, vector<1x8x32xf32>
    %1 = vector.shape_cast %0 : vector<1x8x32xf32> to vector<8x32xf32>
    %cst = arith.constant dense<0.000000e+00> : vector<8xf32>
    %2 = vector.multi_reduction <add>, %1, %cst [1] : vector<8x32xf32> to vector<8xf32>
    %3 = vector.shape_cast %2 : vector<8xf32> to vector<8x1xf32>
    %cst_2 = arith.constant 3.200000e+01 : f32
    %4 = vector.broadcast %cst_2 : f32 to vector<8x1xf32>
    %5 = arith.divf %3, %4 : vector<8x1xf32>
    %6 = arith.mulf %1, %1 : vector<8x32xf32>
    %cst_3 = arith.constant dense<0.000000e+00> : vector<8xf32>
    %7 = vector.multi_reduction <add>, %6, %cst_3 [1] : vector<8x32xf32> to vector<8xf32>
    %8 = vector.shape_cast %7 : vector<8xf32> to vector<8x1xf32>
    %cst_4 = arith.constant 3.200000e+01 : f32
    %9 = vector.broadcast %cst_4 : f32 to vector<8x1xf32>
    %10 = arith.divf %8, %9 : vector<8x1xf32>
    %11 = arith.mulf %5, %5 : vector<8x1xf32>
    %12 = arith.subf %10, %11 : vector<8x1xf32>
    %13 = vector.broadcast %5 : vector<8x1xf32> to vector<8x32xf32>
    %14 = arith.subf %1, %13 : vector<8x32xf32>
    %cst_5 = arith.constant 9.99999974E-6 : f32
    %15 = vector.broadcast %cst_5 : f32 to vector<8x1xf32>
    %16 = arith.addf %12, %15 : vector<8x1xf32>
    %17 = math.rsqrt %16 : vector<8x1xf32>
    %18 = vector.broadcast %17 : vector<8x1xf32> to vector<8x32xf32>
    %19 = arith.mulf %14, %18 : vector<8x32xf32>
    %c0_6 = arith.constant 0 : index
    %c0_7 = arith.constant 0 : index
    %20 = vector.load %arg2[%c0_6, %c0_7] : memref<1x32xf32, #tpu.memory_space<vmem>>, vector<1x32xf32>
    %21 = vector.broadcast %20 : vector<1x32xf32> to vector<8x32xf32>
    %22 = arith.mulf %19, %21 : vector<8x32xf32>
    %c0_8 = arith.constant 0 : index
    %c0_9 = arith.constant 0 : index
    %23 = vector.load %arg3[%c0_8, %c0_9] : memref<1x32xf32, #tpu.memory_space<vmem>>, vector<1x32xf32>
    %24 = vector.broadcast %23 : vector<1x32xf32> to vector<8x32xf32>
    %25 = arith.addf %22, %24 : vector<8x32xf32>
    %26 = arith.truncf %25 : vector<8x32xf32> to vector<8x32xbf16>
    %c0_10 = arith.constant 0 : index
    %c0_11 = arith.constant 0 : index
    %27 = vector.load %arg4[%c0_10, %c0_11] : memref<32x32xbf16, #tpu.memory_space<vmem>>, vector<32x32xbf16>
    %cst_12 = arith.constant dense<0.000000e+00> : vector<8x32xf32>
    %28 = tpu.matmul %26, %27, %cst_12 {dimension_numbers = #tpu.dot_dimension_numbers<[1], [0], [0], [1], [0, 0, 1, 1], [], []>} : vector<8x32xbf16>, vector<32x32xbf16>, vector<8x32xf32> -> vector<8x32xf32>
    %c0_13 = arith.constant 0 : index
    %c0_14 = arith.constant 0 : index
    %29 = vector.load %arg5[%c0_13, %c0_14] : memref<32x32xbf16, #tpu.memory_space<vmem>>, vector<32x32xbf16>
    %cst_15 = arith.constant dense<0.000000e+00> : vector<8x32xf32>
    %30 = tpu.matmul %26, %29, %cst_15 {dimension_numbers = #tpu.dot_dimension_numbers<[1], [0], [0], [1], [0, 0, 1, 1], [], []>} : vector<8x32xbf16>, vector<32x32xbf16>, vector<8x32xf32> -> vector<8x32xf32>
    %c0_16 = arith.constant 0 : index
    %c0_17 = arith.constant 0 : index
    %31 = vector.load %arg6[%c0_16, %c0_17] : memref<32x32xbf16, #tpu.memory_space<vmem>>, vector<32x32xbf16>
    %cst_18 = arith.constant dense<0.000000e+00> : vector<8x32xf32>
    %32 = tpu.matmul %26, %31, %cst_18 {dimension_numbers = #tpu.dot_dimension_numbers<[1], [0], [0], [1], [0, 0, 1, 1], [], []>} : vector<8x32xbf16>, vector<32x32xbf16>, vector<8x32xf32> -> vector<8x32xf32>
    %33 = vector.shape_cast %28 : vector<8x32xf32> to vector<8x4x8xf32>
    %34 = tpu.transpose %33, [1, 0, 2] : vector<8x4x8xf32> -> vector<4x8x8xf32>
    %35 = arith.truncf %34 : vector<4x8x8xf32> to vector<4x8x8xbf16>
    %36 = vector.shape_cast %30 : vector<8x32xf32> to vector<8x4x8xf32>
    %37 = tpu.transpose %36, [1, 0, 2] : vector<8x4x8xf32> -> vector<4x8x8xf32>
    %38 = arith.truncf %37 : vector<4x8x8xf32> to vector<4x8x8xbf16>
    %39 = vector.shape_cast %32 : vector<8x32xf32> to vector<8x4x8xf32>
    %40 = tpu.transpose %39, [1, 0, 2] : vector<8x4x8xf32> -> vector<4x8x8xf32>
    %41 = arith.truncf %40 : vector<4x8x8xf32> to vector<4x8x8xbf16>
    "tpu.trace_start"() <{level = 10 : i32, message = "htd,hsd->hts"}> : () -> ()
    %cst_19 = arith.constant dense<0.000000e+00> : vector<4x8x8xf32>
    %42 = tpu.matmul %35, %38, %cst_19 {dimension_numbers = #tpu.dot_dimension_numbers<[2], [2], [1], [1], [0, 0, 0, 1, 1, 1], [0], [0]>} : vector<4x8x8xbf16>, vector<4x8x8xbf16>, vector<4x8x8xf32> -> vector<4x8x8xf32>
    "tpu.trace_stop"() : () -> ()
    %cst_20 = arith.constant 0.176776692 : f32
    %43 = vector.broadcast %cst_20 : f32 to vector<4x8x8xf32>
    %44 = arith.mulf %42, %43 : vector<4x8x8xf32>
    %45 = tpu.iota {dimensions = array<i32: 0>} : vector<8x8xi32>
    %46 = tpu.iota {dimensions = array<i32: 1>} : vector<8x8xi32>
    %47 = arith.cmpi sle, %46, %45 : vector<8x8xi32>
    %48 = vector.shape_cast %47 : vector<8x8xi1> to vector<1x8x8xi1>
    %cst_21 = arith.constant -1.000000e+30 : f32
    %49 = vector.shape_cast %48 : vector<1x8x8xi1> to vector<1x8x8xi1>
    %50 = vector.broadcast %49 : vector<1x8x8xi1> to vector<4x8x8xi1>
    %51 = vector.broadcast %cst_21 : f32 to vector<4x8x8xf32>
    %52 = arith.select %50, %44, %51 : vector<4x8x8xi1>, vector<4x8x8xf32>
    %cst_22 = arith.constant dense<0xFF800000> : vector<4x8xf32>
    %53 = vector.multi_reduction <maximumf>, %52, %cst_22 [2] : vector<4x8x8xf32> to vector<4x8xf32>
    %54 = vector.shape_cast %53 : vector<4x8xf32> to vector<4x8x1xf32>
    %55 = vector.broadcast %54 : vector<4x8x1xf32> to vector<4x8x8xf32>
    %56 = arith.subf %52, %55 : vector<4x8x8xf32>
    %57 = math.exp %56 : vector<4x8x8xf32>
    %cst_23 = arith.constant dense<0.000000e+00> : vector<4x8xf32>
    %58 = vector.multi_reduction <add>, %57, %cst_23 [2] : vector<4x8x8xf32> to vector<4x8xf32>
    %59 = vector.shape_cast %58 : vector<4x8xf32> to vector<4x8x1xf32>
    %60 = tpu.reciprocal %59 {approx = true} : vector<4x8x1xf32> -> vector<4x8x1xf32>
    %61 = vector.broadcast %60 : vector<4x8x1xf32> to vector<4x8x8xf32>
    %62 = arith.mulf %57, %61 : vector<4x8x8xf32>
    %63 = arith.truncf %62 : vector<4x8x8xf32> to vector<4x8x8xbf16>
    "tpu.trace_start"() <{level = 10 : i32, message = "hts,hsd->htd"}> : () -> ()
    %cst_24 = arith.constant dense<0.000000e+00> : vector<4x8x8xf32>
    %64 = tpu.matmul %63, %41, %cst_24 {dimension_numbers = #tpu.dot_dimension_numbers<[2], [1], [1], [2], [0, 0, 0, 1, 1, 2], [0], [0]>} : vector<4x8x8xbf16>, vector<4x8x8xbf16>, vector<4x8x8xf32> -> vector<4x8x8xf32>
    "tpu.trace_stop"() : () -> ()
    %65 = tpu.transpose %64, [1, 0, 2] : vector<4x8x8xf32> -> vector<8x4x8xf32>
    %66 = vector.shape_cast %65 : vector<8x4x8xf32> to vector<8x32xf32>
    %67 = arith.truncf %66 : vector<8x32xf32> to vector<8x32xbf16>
    %c0_25 = arith.constant 0 : index
    %c0_26 = arith.constant 0 : index
    %68 = vector.load %arg7[%c0_25, %c0_26] : memref<32x32xbf16, #tpu.memory_space<vmem>>, vector<32x32xbf16>
    %cst_27 = arith.constant dense<0.000000e+00> : vector<8x32xf32>
    %69 = tpu.matmul %67, %68, %cst_27 {dimension_numbers = #tpu.dot_dimension_numbers<[1], [0], [0], [1], [0, 0, 1, 1], [], []>} : vector<8x32xbf16>, vector<32x32xbf16>, vector<8x32xf32> -> vector<8x32xf32>
    %c0_28 = arith.constant 0 : index
    %c0_29 = arith.constant 0 : index
    %70 = vector.load %arg8[%c0_28, %c0_29] : memref<1x32xf32, #tpu.memory_space<vmem>>, vector<1x32xf32>
    %71 = vector.broadcast %70 : vector<1x32xf32> to vector<8x32xf32>
    %72 = arith.addf %69, %71 : vector<8x32xf32>
    %c0_30 = arith.constant 0 : index
    %c0_31 = arith.constant 0 : index
    %c0_32 = arith.constant 0 : index
    %73 = vector.load %arg1[%c0_30, %c0_31, %c0_32] : memref<1x8x32xf32, #tpu.memory_space<vmem>>, vector<1x8x32xf32>
    %74 = vector.shape_cast %73 : vector<1x8x32xf32> to vector<8x32xf32>
    %75 = arith.addf %74, %72 : vector<8x32xf32>
    %cst_33 = arith.constant dense<0.000000e+00> : vector<8xf32>
    %76 = vector.multi_reduction <add>, %75, %cst_33 [1] : vector<8x32xf32> to vector<8xf32>
    %77 = vector.shape_cast %76 : vector<8xf32> to vector<8x1xf32>
    %cst_34 = arith.constant 3.200000e+01 : f32
    %78 = vector.broadcast %cst_34 : f32 to vector<8x1xf32>
    %79 = arith.divf %77, %78 : vector<8x1xf32>
    %80 = arith.mulf %75, %75 : vector<8x32xf32>
    %cst_35 = arith.constant dense<0.000000e+00> : vector<8xf32>
    %81 = vector.multi_reduction <add>, %80, %cst_35 [1] : vector<8x32xf32> to vector<8xf32>
    %82 = vector.shape_cast %81 : vector<8xf32> to vector<8x1xf32>
    %cst_36 = arith.constant 3.200000e+01 : f32
    %83 = vector.broadcast %cst_36 : f32 to vector<8x1xf32>
    %84 = arith.divf %82, %83 : vector<8x1xf32>
    %85 = arith.mulf %79, %79 : vector<8x1xf32>
    %86 = arith.subf %84, %85 : vector<8x1xf32>
    %87 = vector.broadcast %79 : vector<8x1xf32> to vector<8x32xf32>
    %88 = arith.subf %75, %87 : vector<8x32xf32>
    %cst_37 = arith.constant 9.99999974E-6 : f32
    %89 = vector.broadcast %cst_37 : f32 to vector<8x1xf32>
    %90 = arith.addf %86, %89 : vector<8x1xf32>
    %91 = math.rsqrt %90 : vector<8x1xf32>
    %92 = vector.broadcast %91 : vector<8x1xf32> to vector<8x32xf32>
    %93 = arith.mulf %88, %92 : vector<8x32xf32>
    %c0_38 = arith.constant 0 : index
    %c0_39 = arith.constant 0 : index
    %94 = vector.load %arg9[%c0_38, %c0_39] : memref<1x32xf32, #tpu.memory_space<vmem>>, vector<1x32xf32>
    %95 = vector.broadcast %94 : vector<1x32xf32> to vector<8x32xf32>
    %96 = arith.mulf %93, %95 : vector<8x32xf32>
    %c0_40 = arith.constant 0 : index
    %c0_41 = arith.constant 0 : index
    %97 = vector.load %arg10[%c0_40, %c0_41] : memref<1x32xf32, #tpu.memory_space<vmem>>, vector<1x32xf32>
    %98 = vector.broadcast %97 : vector<1x32xf32> to vector<8x32xf32>
    %99 = arith.addf %96, %98 : vector<8x32xf32>
    %100 = arith.truncf %99 : vector<8x32xf32> to vector<8x32xbf16>
    %c0_42 = arith.constant 0 : index
    %c0_43 = arith.constant 0 : index
    %101 = vector.load %arg11[%c0_42, %c0_43] : memref<32x128xbf16, #tpu.memory_space<vmem>>, vector<32x128xbf16>
    %cst_44 = arith.constant dense<0.000000e+00> : vector<8x128xf32>
    %102 = tpu.matmul %100, %101, %cst_44 {dimension_numbers = #tpu.dot_dimension_numbers<[1], [0], [0], [1], [0, 0, 1, 1], [], []>} : vector<8x32xbf16>, vector<32x128xbf16>, vector<8x128xf32> -> vector<8x128xf32>
    %c0_45 = arith.constant 0 : index
    %c0_46 = arith.constant 0 : index
    %103 = vector.load %arg12[%c0_45, %c0_46] : memref<1x128xf32, #tpu.memory_space<vmem>>, vector<1x128xf32>
    %104 = vector.broadcast %103 : vector<1x128xf32> to vector<8x128xf32>
    %105 = arith.addf %102, %104 : vector<8x128xf32>
    %cst_47 = arith.constant 0.000000e+00 : f32
    %106 = vector.broadcast %cst_47 : f32 to vector<8x128xf32>
    %107 = arith.maximumf %105, %106 : vector<8x128xf32>
    %108 = arith.truncf %107 : vector<8x128xf32> to vector<8x128xbf16>
    %c0_48 = arith.constant 0 : index
    %c0_49 = arith.constant 0 : index
    %109 = vector.load %arg13[%c0_48, %c0_49] : memref<128x32xbf16, #tpu.memory_space<vmem>>, vector<128x32xbf16>
    %cst_50 = arith.constant dense<0.000000e+00> : vector<8x32xf32>
    %110 = tpu.matmul %108, %109, %cst_50 {dimension_numbers = #tpu.dot_dimension_numbers<[1], [0], [0], [1], [0, 0, 1, 1], [], []>} : vector<8x128xbf16>, vector<128x32xbf16>, vector<8x32xf32> -> vector<8x32xf32>
    %c0_51 = arith.constant 0 : index
    %c0_52 = arith.constant 0 : index
    %111 = vector.load %arg14[%c0_51, %c0_52] : memref<1x32xf32, #tpu.memory_space<vmem>>, vector<1x32xf32>
    %112 = vector.broadcast %111 : vector<1x32xf32> to vector<8x32xf32>
    %113 = arith.addf %110, %112 : vector<8x32xf32>
    %114 = arith.addf %75, %113 : vector<8x32xf32>
    %115 = arith.truncf %114 : vector<8x32xf32> to vector<8x32xbf16>
    %c0_53 = arith.constant 0 : index
    %c0_54 = arith.constant 0 : index
    %c0_55 = arith.constant 0 : index
    %116 = vector.load %arg15[%c0_53, %c0_54, %c0_55] : memref<1x8x32xbf16, #tpu.memory_space<vmem>>, vector<1x8x32xbf16>
    %117 = vector.shape_cast %116 : vector<1x8x32xbf16> to vector<8x32xbf16>
    %118 = vector.shape_cast %115 : vector<8x32xbf16> to vector<1x8x32xbf16>
    tpu.vector_store %arg15[%c0_53, %c0_54, %c0_55], %118 {strides = array<i32>} : memref<1x8x32xbf16, #tpu.memory_space<vmem>>, vector<1x8x32xbf16>,
    return
  }
  func.func @transform_0(%arg0: i32) -> (i32, i32, i32) {
    %c0_i32 = arith.constant 0 : i32
    %c0_i32_0 = arith.constant 0 : i32
    %c0_i32_1 = arith.constant 0 : i32
    return %arg0, %c0_i32, %c0_i32_0 : i32, i32, i32
  }
  func.func @transform_1(%arg0: i32) -> (i32, i32) {
    %c0_i32 = arith.constant 0 : i32
    %c0_i32_0 = arith.constant 0 : i32
    %c0_i32_1 = arith.constant 0 : i32
    return %c0_i32, %c0_i32_0 : i32, i32
  }
  func.func @transform_2(%arg0: i32) -> (i32, i32) {
    %c0_i32 = arith.constant 0 : i32
    %c0_i32_0 = arith.constant 0 : i32
    %c0_i32_1 = arith.constant 0 : i32
    return %c0_i32, %c0_i32_0 : i32, i32
  }
  func.func @transform_3(%arg0: i32) -> (i32, i32) {
    %c0_i32 = arith.constant 0 : i32
    %c0_i32_0 = arith.constant 0 : i32
    %c0_i32_1 = arith.constant 0 : i32
    return %c0_i32, %c0_i32_0 : i32, i32
  }
  func.func @transform_4(%arg0: i32) -> (i32, i32) {
    %c0_i32 = arith.constant 0 : i32
    %c0_i32_0 = arith.constant 0 : i32
    %c0_i32_1 = arith.constant 0 : i32
    return %c0_i32, %c0_i32_0 : i32, i32
  }
  func.func @transform_5(%arg0: i32) -> (i32, i32) {
    %c0_i32 = arith.constant 0 : i32
    %c0_i32_0 = arith.constant 0 : i32
    %c0_i32_1 = arith.constant 0 : i32
    return %c0_i32, %c0_i32_0 : i32, i32
  }
  func.func @transform_6(%arg0: i32) -> (i32, i32) {
    %c0_i32 = arith.constant 0 : i32
    %c0_i32_0 = arith.constant 0 : i32
    %c0_i32_1 = arith.constant 0 : i32
    return %c0_i32, %c0_i32_0 : i32, i32
  }
  func.func @transform_7(%arg0: i32) -> (i32, i32) {
    %c0_i32 = arith.constant 0 : i32
    %c0_i32_0 = arith.constant 0 : i32
    %c0_i32_1 = arith.constant 0 : i32
    return %c0_i32, %c0_i32_0 : i32, i32
  }
  func.func @transform_8(%arg0: i32) -> (i32, i32) {
    %c0_i32 = arith.constant 0 : i32
    %c0_i32_0 = arith.constant 0 : i32
    %c0_i32_1 = arith.constant 0 : i32
    return %c0_i32, %c0_i32_0 : i32, i32
  }
  func.func @transform_9(%arg0: i32) -> (i32, i32) {
    %c0_i32 = arith.constant 0 : i32
    %c0_i32_0 = arith.constant 0 : i32
    %c0_i32_1 = arith.constant 0 : i32
    return %c0_i32, %c0_i32_0 : i32, i32
  }
  func.func @transform_10(%arg0: i32) -> (i32, i32) {
    %c0_i32 = arith.constant 0 : i32
    %c0_i32_0 = arith.constant 0 : i32
    %c0_i32_1 = arith.constant 0 : i32
    return %c0_i32, %c0_i32_0 : i32, i32
  }
  func.func @transform_11(%arg0: i32) -> (i32, i32) {
    %c0_i32 = arith.constant 0 : i32
    %c0_i32_0 = arith.constant 0 : i32
    %c0_i32_1 = arith.constant 0 : i32
    return %c0_i32, %c0_i32_0 : i32, i32
  }
  func.func @transform_12(%arg0: i32) -> (i32, i32) {
    %c0_i32 = arith.constant 0 : i32
    %c0_i32_0 = arith.constant 0 : i32
    %c0_i32_1 = arith.constant 0 : i32
    return %c0_i32, %c0_i32_0 : i32, i32
  }
  func.func @transform_13(%arg0: i32) -> (i32, i32) {
    %c0_i32 = arith.constant 0 : i32
    %c0_i32_0 = arith.constant 0 : i32
    %c0_i32_1 = arith.constant 0 : i32
    return %c0_i32, %c0_i32_0 : i32, i32
  }
  func.func @transform_14(%arg0: i32) -> (i32, i32, i32) {
    %c0_i32 = arith.constant 0 : i32
    %c0_i32_0 = arith.constant 0 : i32
    %c0_i32_1 = arith.constant 0 : i32
    return %arg0, %c0_i32, %c0_i32_0 : i32, i32, i32
  }
}

</mosaic_0001>

<bundles_post_ra>
// kernel: tpu_custom_call.1
= control target key start
LH: loop header
LB: loop body
LE: loop exit
PB: predicated region body
PF: predicated region fallthrough
CT: control target
= control target key end

     0   :  { %s3194_s0 = inlined_call_operand.vmem [shape: f32[2,8,32], index: 0, kind: input, shape index: {}]   ;;  %s3195_s1 = inlined_call_operand.vmem [shape: f32[1,32], index: 1, kind: input, shape index: {}]   ;;  %s3196_s2 = inlined_call_operand.vmem [shape: f32[1,32], index: 2, kind: input, shape index: {}]   ;;  %s3197_s3 = inlined_call_operand.vmem [shape: bf16[32,32], index: 3, kind: input, shape index: {}]   ;;  %s3198_s4 = inlined_call_operand.vmem [shape: bf16[32,32], index: 4, kind: input, shape index: {}]   ;;  %s3199_s5 = inlined_call_operand.vmem [shape: bf16[32,32], index: 5, kind: input, shape index: {}]   ;;  %s3200_s6 = inlined_call_operand.vmem [shape: bf16[32,32], index: 6, kind: input, shape index: {}]   ;;  %s3201_s7 = inlined_call_operand.hbm [shape: f32[1,32], index: 7, kind: input, shape index: {}]   ;;  %s3202_s8 = inlined_call_operand.hbm [shape: f32[1,32], index: 8, kind: input, shape index: {}]   ;;  %s3203_s9 = inlined_call_operand.hbm [shape: f32[1,32], index: 9, kind: input, shape index: {}]   ;;  %s3204_s10 = inlined_call_operand.vmem [shape: bf16[32,128], index: 10, kind: input, shape index: {}]   ;;  %s3205_s11 = inlined_call_operand.vmem [shape: f32[1,128], index: 11, kind: input, shape index: {}]   ;;  %s3206_s12 = inlined_call_operand.vmem [shape: bf16[128,32], index: 12, kind: input, shape index: {}]   ;;  %s3207_s13 = inlined_call_operand.vmem [shape: f32[1,32], index: 13, kind: input, shape index: {}]   ;;  %s3208_s14 = inlined_call_operand.hbm [shape: bf16[2,8,32], index: 14, kind: output, shape index: {}]  }
   0x1   :  { %3221 = sst [smem:[#allocation19_spill]] %s3208_s14 }
   0x2   :  { %19 = vsyncpa [#allocation3], 0 }
   0x3   :  { %20 = vsyncpa [#allocation6], 0 }
   0x4   :  { %21 = vsyncpa [#allocation4], 0 }
   0x5   :  { %23 = vsyncpa [#allocation4 + $0x1], 0  ;;  %s2705_s29 = smov 0   ;;  %s2707_s30 = smov 0  }
   0x6   :  { %s2709_s15 = smov 0   ;;  %s2711_s16 = smov 0  }
   0x7 LB: > { %3222 = sst [smem:[#allocation12_spill]] %s2602_s29  ;;  %s2726_s17 = sadd.s32 4294967295, %s2614_s16   ;;  %s2614_s16 = sphi %s2711_s16, %s3246_s16   ;;  %s2610_s15 = sphi %s2709_s15, %s3251_s15   ;;  %s2606_s30 = sphi %s2707_s30, %s3250_s30   ;;  %s2602_s29 = sphi %s2705_s29, %s3249_s29  }
   0x8   : > { %3223 = sst [smem:[#allocation13_spill]] %s2610_s15  ;;  %s2132_s18 = sadd.s32 4294967294, %s2614_s16  }
   0x9   : > { %3224 = sst [smem:[#allocation14_spill]] %s2614_s16  ;;  %s2730_s19 = sadd.s32 1, %s2614_s16  }
   0xa   : > { %3225 = sst [smem:[#allocation15_spill]] %s2730_s19  ;;  %s335_s20 = sadd.s32 1, %s2610_s15 }
   0xb   : > { %s332_s21 = ssub.s32 %s2614_s16, %s2730_s19  ;;  %p345_p0 = scmp.ne.s32.totalorder %s2610_s15, %s2606_s30 }
   0xc   : > { %p333_p1 = scmp.eq.s32.totalorder %s332_s21, 0  ;;  %p346_p2 = scmp.eq.s32.totalorder %s2726_s17, 1 }
   0xd   : > { %p351_p3 = scmp.ne.s32.totalorder %s2606_s30, %s2602_s29  ;;  %p352_p4 = scmp.eq.s32.totalorder %s2132_s18, 1 }
   0xe   : > { %s2741_s22 = scalar_select %p333_p1, %s2610_s15, %s335_s20  }
   0xf   : > { %p2743_p5 = por %p346_p2, %p345_p0  ;;  %p2747_p6 = por %p352_p4, %p351_p3 }
  0x10   : > { %3226 = sst [smem:[#allocation16_spill]] %s2741_s22  ;;  %p2133_p7 = scmp.ge.s32.totalorder %s2614_s16, 1 }
  0x11   : > { %s3227_s23 = scalar_select %p2743_p5, 1, 0 }
  0x12   : > { %s3229_s24 = scalar_select %p2747_p6, 1, 0 }
  0x13   : > { %3228 = sst [smem:[#allocation17_spill]] %s3227_s23  ;;  %p359_p8 = scmp.lt.s32.totalorder %s2614_s16, 3 }
  0x14   : > { %3230 = sst [smem:[#allocation18_spill]] %s3229_s24  ;;  %p3215_p9 = scmp.eq.s32.totalorder %s2726_s17, 0 }
  0x15   : > { %p2754_p10 = pnand %p2133_p7, %p359_p8  ;;  %s2616_s26 = smov [#allocation5]  }
  0x16   : > { %s401_s27 = sshll.u32 %s2616_s26, 4  ;;  %s2617_s28 = smov [#allocation2]   ;;  %s402_s27 = int_to_ptr.vmem [resolvable:$true] %s401_s27 }
  0x17   : > { %s3231_s25 = scalar_select %p2754_p10, 1, 0 }
  0x18   : > { %p2356_p11 = pneg %p2754_p10  ;;  %s390_s18 = sshll.u32 %s2617_s28, 4  ;;  %s2766_s18 = int_to_ptr.vmem [resolvable:$true] %s390_s18 }
  0x19   : > { %s2618_s21 = smov [#allocation7]   ;;  %s2460_s26 = scalar_lea.hbm %s3202_s8, 16 }
  0x1a   : > { %p2762_p12 = pnand %p3215_p9, %p2356_p11  ;;  %s412_s22 = sshll.u32 %s2618_s21, 4  ;;  %s2768_s22 = int_to_ptr.vmem [resolvable:$true] %s412_s22 }
  0x1b   : > { %p2461_p13 = scmp.ne.s32.totalorder %s3202_s8, %s2460_s26  ;;  %p2467_p3 = scmp.lt.u32.totalorder %s2460_s26, %s3202_s8 }
  0x1c   : > { %p2778_p0 = pneg %p2762_p12 }
  0x1e   : > { %p2463_p1 = pnand %p2778_p0, %p2461_p13 }
  0x20   : > { %p2464_p2 = pneg %p2463_p1 }
  0x22   : > { %p2469_p4 = pnand %p2467_p3, %p2464_p2 }
  0x24   : > { %2472 = shalt.err (!%p2469_p4)
}
  0x25   : > { %s2473_s15 = scalar_lea.vmem %s402_s27, 16  ;;  %s2480_s29 = scalar_lea.vmem %s402_s27, 32 }
  0x26   : > { %p2474_p7 = scmp.ne.s32.totalorder %s402_s27, %s2473_s15  ;;  %p2481_p9 = scmp.lt.s32.totalorder %s402_s27, %s402_s27 }
  0x27   : > { %p2482_p6 = scmp.lt.s32.totalorder %s2480_s29, %s2473_s15 }
  0x28   : > { %p2476_p8 = pnand %p2474_p7, %p2778_p0 }
  0x29   : > { %p2483_p5 = por %p2482_p6, %p2481_p9 }
  0x2a   : > { %p2477_p11 = pneg %p2476_p8 }
  0x2c   : > { %p2484_p10 = pnand %p2483_p5, %p2477_p11 }
  0x2e   : > { %2487 = shalt.err (!%p2484_p10)
}
  0x2f   : > { %2362 = dma.hbm_to_vmem [thread:$0]  (!%p2762_p12), %s3202_s8, 16, %s402_s27, [#allocation6]  }
  0x30   : > { %s2488_s21 = scalar_lea.hbm %s3201_s7, 16 }
  0x31   : > { %p2489_p13 = scmp.ne.s32.totalorder %s3201_s7, %s2488_s21  ;;  %p2495_p5 = scmp.lt.u32.totalorder %s2488_s21, %s3201_s7 }
  0x33   : > { %p2491_p1 = pnand %p2489_p13, %p2778_p0 }
  0x35   : > { %p2492_p6 = pneg %p2491_p1 }
  0x37   : > { %p2497_p9 = pnand %p2495_p5, %p2492_p6 }
  0x39   : > { %2500 = shalt.err (!%p2497_p9)
}
  0x3a   : > { %s2501_s27 = scalar_lea.vmem %s2766_s18, 16  ;;  %s2508_s14 = scalar_lea.vmem %s2766_s18, 32 }
  0x3b   : > { %p2502_p10 = scmp.ne.s32.totalorder %s2766_s18, %s2501_s27  ;;  %p2509_p4 = scmp.lt.s32.totalorder %s2766_s18, %s2766_s18 }
  0x3c   : > { %p2510_p7 = scmp.lt.s32.totalorder %s2508_s14, %s2501_s27 }
  0x3d   : > { %p2504_p2 = pnand %p2502_p10, %p2778_p0 }
  0x3e   : > { %p2511_p8 = por %p2510_p7, %p2509_p4 }
  0x3f   : > { %p2505_p3 = pneg %p2504_p2 }
  0x41   : > { %p2512_p11 = pnand %p2511_p8, %p2505_p3 }
  0x43   : > { %2515 = shalt.err (!%p2512_p11)
}
  0x44   : > { %2359 = dma.hbm_to_vmem [thread:$0]  (!%p2762_p12), %s3201_s7, 16, %s2766_s18, [#allocation3]  }
  0x45   : > { %s2516_s26 = scalar_lea.hbm %s3203_s9, 16 }
  0x46   : > { %p2517_p13 = scmp.ne.s32.totalorder %s3203_s9, %s2516_s26  ;;  %p2523_p5 = scmp.lt.u32.totalorder %s2516_s26, %s3203_s9 }
  0x48   : > { %p2519_p1 = pnand %p2517_p13, %p2778_p0 }
  0x4a   : > { %p2520_p6 = pneg %p2519_p1 }
  0x4c   : > { %p2525_p9 = pnand %p2523_p5, %p2520_p6 }
  0x4e   : > { %2528 = shalt.err (!%p2525_p9)
}
  0x4f   : > { %s2529_s18 = scalar_lea.vmem %s2768_s22, 16  ;;  %s2536_s14 = scalar_lea.vmem %s2768_s22, 32 }
  0x50   : > { %p2530_p10 = scmp.ne.s32.totalorder %s2768_s22, %s2529_s18  ;;  %p2537_p4 = scmp.lt.s32.totalorder %s2768_s22, %s2768_s22 }
  0x51   : > { %p2538_p7 = scmp.lt.s32.totalorder %s2536_s14, %s2529_s18 }
  0x52   : > { %p2532_p2 = pnand %p2530_p10, %p2778_p0 }
  0x53   : > { %p2539_p8 = por %p2538_p7, %p2537_p4 }
  0x54   : > { %p2533_p3 = pneg %p2532_p2 }
  0x56   : > { %p2540_p11 = pnand %p2539_p8, %p2533_p3 }
  0x58   : > { %2543 = shalt.err (!%p2540_p11)
}
  0x59   : > { %2365 = dma.hbm_to_vmem [thread:$0]  (!%p2762_p12), %s3203_s9, 16, %s2768_s22, [#allocation6]  }
  0x5a   : > { %p3234_p13 = scmp.ne.s32.totalorder %s3231_s25, 0 }
  0x5b   : > { %p3235_p0 = scmp.eq.s32.totalorder (!%p3234_p13), %s2726_s17, 0 }
  0x5c   : > { %444 = sbr.rel (%p3234_p13) target bundleno = 2426 (0x97a), region = 76 }
  0x63   : > { %2589 = dma.done.wait (%p3235_p0), [#allocation3], 16   ;;  %p3236_p1 = pmov %p3235_p0 }
  0x64   : > { %p3237_p6 = pmov %p3235_p0 }
  0x65   : > { %2591 = vsyncadd (%p3236_p1), [#allocation3], 4294967280 }
  0x66   : > { %2593 = dma.done.wait (%p3237_p6), [#allocation6], 32   ;;  %p3238_p5 = pmov %p3235_p0 }
  0x67   : > { %p497_p9 = scmp.lt.s32.totalorder %s2726_s17, 1  ;;  %vm503_vm0 = vcmask 261120   ;;  %v2422_v4 = vld [vmem:[%s3197_s3] sm:$0xff]   ;;  %v2619_v5 = vmov 0.0   ;;  %vm2620_vm1 = vmmov 0   ;;  %v2423_v6 = vld [vmem:[%s3197_s3 + $0x8] sm:$0xff]   ;;  %v723_v40 = vlaneseq }
  0x68   : > { %2595 = vsyncadd (%p3238_p5), [#allocation6], 4294967264  ;;  %2234 = vmatprep.subr.bf16.mxu0 %v2619_v5  ;;  %2238 = vmatprep.mubr.msk.bf16.mxu0 %vm2620_vm1, %v2619_v5  ;;  %v2144_v16 = vld [vmem:[%s3195_s1] ss:$0 sm:$0xff]  ;;  %v2425_v23 = vld [vmem:[%s3198_s4 + $0x8] sm:$0xff]   ;;  %s2621_s26 = smov 104  }
  0x69   : > { %s498_s20 = scalar_select %p497_p9, %s2726_s17, 1  ;;  %2235 = vmatpush3.bf16.msra.mxu0 %v2422_v4  ;;  %2258 = vmatprep.subr.bf16.mxu1 %v2619_v5  ;;  %v2145_v18 = vld [vmem:[%s3196_s2] ss:$0 sm:$0xff]  ;;  %v2427_v25 = vld [vmem:[%s3199_s5 + $0x8] sm:$0xff]   ;;  %v2624_v38 = vmov 1983009808  }
  0x6a   : > { %2236 = vmatprep.subr.bf16.mxu0 %v2619_v5  ;;  %2260 = vmatprep.mubr.msk.bf16.mxu1 %vm2620_vm1, %v2619_v5  ;;  %v2424_v21 = vld [vmem:[%s3198_s4] sm:$0xff]   ;;  %s2622_s21 = smov 120   ;;  %s2623_s15 = smov 112   ;;  %v721_v39 = vunpack.c.l.s4 %v2624_v38  ;;  %v2625_v41 = vmov 1934713408   ;;  %v2924_v44 = vshrl.u32 %v723_v40, 7 }
  0x6b   : > { %s2143_s22 = sshll.u32 %s498_s20, 3  ;;  %v2426_v24 = vld [vmem:[%s3199_s5] sm:$0xff]   ;;  %v753_v42 = vunpack.c.l.s4 %v2625_v41  ;;  %vm1158_vm2 = vcmask 64512   ;;  %vm1409_vm4 = vcmask 1043456   ;;  %s2626_s23 = smov 16   ;;  %vm1740_vm5 = vcmask 130048  }
  0x6c   : > { %s500_s24 = scalar_lea.vmem %s3194_s0, %s2143_s22  ;;  %v722_v43 = vunpack.c.0.s8 %v721_v39  ;;  %s2627_s19 = smov 8   ;;  %vm1742_vm6 = vcmask 195584   ;;  %vm2026_vm7 = vcmask 257024  }
  0x6d   : > { %v2857_v0 = vld [vmem:[%s500_s24] sm:$0xff]  ;;  %2237 = vmatpush3.bf16.msra.mxu0 %v2423_v6  ;;  %v754_v47 = vunpack.c.0.s8 %v753_v42  ;;  %s2628_s20 = smov 24   ;;  %s3239_s14 = sld [smem:[#allocation17_spill]] }
  0x6e   : > { %v504_v1 = vsel %vm503_vm0, %v2857_v0, 0.0  ;;  %v509_v2 = vmul.f32 %v2857_v0, %v2857_v0  ;;  %2242 = vmatprep.subr.bf16.mxu0 %v2619_v5  ;;  %v2927_v48 = vsub.s32 %v722_v43, %v2924_v44  ;;  %s3240_s25 = sld [smem:[#allocation19_spill]] }
  0x6f   : > { %505 = vadd.xlane.f32.xlu0 %v504_v1  ;;  %v2930_v54 = vsub.s32 %v754_v47, %v2924_v44 }
  0x70   : > { %v510_v3 = vsel %vm503_vm0, %v509_v2, 0.0 }
  0x73   : > { %511 = vadd.xlane.f32.xlu0 %v510_v3  ;;  %p3241_p10 = scmp.ne.s32.totalorder %s3239_s14, 0 }
  0xfc   : > { %v506_v7 = vpop.xlane.xlu0 %505 }
  0xfd   : > { %v508_v8 = vmul.f32 0.03125, %v506_v7 }
  0xff   : > { %v514_v10 = vmul.f32 %v508_v8, %v508_v8  ;;  %v516_v14 = vsub.f32 %v2857_v0, %v508_v8 }
 0x100   : > { %v512_v9 = vpop.xlane.xlu0 %511 }
 0x101   : > { %v513_v11 = vmul.f32 0.03125, %v512_v9 }
 0x103   : > { %v515_v12 = vsub.f32 %v513_v11, %v514_v10 }
 0x105   : > { %v517_v13 = vadd.f32 1e-05, %v515_v12 }
 0x107   : > { %2440 = vrsqrt.f32 %v517_v13 }
 0x111   : > { %v2441_v15 = vpop.eup %2440 }
 0x112   : > { %v519_v17 = vmul.f32 %v2441_v15, %v516_v14 }
 0x114   : > { %v527_v19 = vmul.f32 %v2144_v16, %v519_v17 }
 0x116   : > { %v535_v20 = vadd.f32 %v2145_v18, %v527_v19 }
 0x118   : > { %v536_v22 = vpack.c.bf16 %v535_v20, %v535_v20 }
 0x11a   : > { %2239 = vmatmul.mubr.msk.bf16.vlgmr.msra.gmra.mrb[0].mxu0 %vm503_vm0, %v536_v22 }
 0x11b   : > { %2243 = vmatpush3.bf16.msra.mxu0 %v2424_v21  ;;  %2246 = vmatprep.mubr.msk.bf16.mxu0 %vm2620_vm1, %v2619_v5 }
 0x11c   : > { %2244 = vmatprep.subr.bf16.mxu0 %v2619_v5 }
 0x11f   : > { %2245 = vmatpush3.bf16.msra.mxu0 %v2425_v23 }
 0x120   : > { %2250 = vmatprep.subr.bf16.mxu0 %v2619_v5 }
 0x122   : > { %2247 = vmatmul.mubr.msk.bf16.vlgmr.msra.gmra.mrb[4].mxu0 %vm503_vm0, %v536_v22 }
 0x123   : > { %2251 = vmatpush3.bf16.msra.mxu0 %v2426_v24  ;;  %2254 = vmatprep.mubr.msk.bf16.mxu0 %vm2620_vm1, %v2619_v5 }
 0x124   : > { %2252 = vmatprep.subr.bf16.mxu0 %v2619_v5 }
 0x127   : > { %2253 = vmatpush3.bf16.msra.mxu0 %v2427_v25 }
 0x128   : > { %2264 = vmatprep.subr.bf16.mxu0 %v2619_v5 }
 0x12a   : > { %2255 = vmatmul.mubr.msk.bf16.vlgmr.msra.gmra.mrb[8].mxu0 %vm503_vm0, %v536_v22 }
 0x12b   : > { %2266 = vmatprep.mubr.msk.bf16.mxu0 %vm2620_vm1, %v2619_v5 }
 0x1ed   : > { %v2910_v26 = vpop.f32.mrb[0].mxu0 }
 0x1ee   : > { %v2240_v27 = vpop.f32.mrb[1].mxu0 }
 0x1ef   : > { %v593_v28 = vpop.f32.mrb[2].mxu0 }
 0x1f0   : > { %v2241_v29 = vpop.f32.mrb[3].mxu0 }
 0x1f5   : > { %v646_v30 = vpop.f32.mrb[4].mxu0 }
 0x1f6   : > { %865 = vrot.lane.b32.xlu0 %v646_v30, %s2621_s26  ;;  %859 = vrot.lane.b32.xlu1 %v646_v30, %s2622_s21  ;;  %v2248_v31 = vpop.f32.mrb[5].mxu0 }
 0x1f7   : > { %v649_v32 = vpop.f32.mrb[6].mxu0 }
 0x1f8   : > { %v2249_v33 = vpop.f32.mrb[7].mxu0 }
 0x1fa   : > { %862 = vrot.lane.b32.xlu1 %v646_v30, %s2623_s15 }
 0x1fd   : > { %v2915_v34 = vpop.f32.mrb[8].mxu0 }
 0x1fe   : > { %709 = vrot.lane.b32.xlu1 %v2910_v26, %s2622_s21  ;;  %v2256_v35 = vpop.f32.mrb[9].mxu0 }
 0x1ff   : > { %v705_v36 = vpop.f32.mrb[10].mxu0 }
 0x200   : > { %v2257_v37 = vpop.f32.mrb[11].mxu0 }
 0x202   : > { %712 = vrot.lane.b32.xlu1 %v2910_v26, %s2623_s15 }
 0x206   : > { %715 = vrot.lane.b32.xlu1 %v2910_v26, %s2621_s26 }
 0x268   : > { %v866_v45 = vpop.permute.xlu0 %865  ;;  %v860_v46 = vpop.permute.xlu1 %859 }
 0x269   : > { %v884_v49 = vcombine.low %v860_v46, %v866_v45  ;;  %v885_v50 = vcombine.high %v860_v46, %v866_v45 }
 0x26b   : > { %v892_v55 = vrot.slane %v884_v49, %v2927_v48  ;;  %v899_v56 = vrot.slane %v885_v50, %v2927_v48 }
 0x26c   : > { %v863_v51 = vpop.permute.xlu1 %862 }
 0x26d   : > { %v868_v52 = vcombine.low %v646_v30, %v863_v51  ;;  %v869_v53 = vcombine.high %v646_v30, %v863_v51 }
 0x26f   : > { %v876_v57 = vrot.slane %v868_v52, %v2927_v48  ;;  %v883_v58 = vrot.slane %v869_v53, %v2927_v48 }
 0x270   : > { %v710_v59 = vpop.permute.xlu1 %709 }
 0x271   : > { %v900_v60 = vcombine.low %v876_v57, %v892_v55  ;;  %v901_v61 = vcombine.high %v876_v57, %v892_v55  ;;  %v916_v62 = vcombine.low %v883_v58, %v899_v56  ;;  %v917_v63 = vcombine.high %v883_v58, %v899_v56 }
 0x273   : > { %v908_v1 = vrot.slane %v900_v60, %v2930_v54  ;;  %v915_v2 = vrot.slane %v901_v61, %v2930_v54  ;;  %v924_v3 = vrot.slane %v916_v62, %v2930_v54  ;;  %v931_v4 = vrot.slane %v917_v63, %v2930_v54 }
 0x274   : > { %v713_v6 = vpop.permute.xlu1 %712 }
 0x275   : > { %v936_v7 = vcombine.low %v908_v1, %v915_v2  ;;  %v2157_v8 = vcombine.high %v908_v1, %v915_v2  ;;  %v952_v9 = vcombine.low %v924_v3, %v931_v4  ;;  %v2158_v10 = vcombine.high %v924_v3, %v931_v4 }
 0x276   : > { %v718_v11 = vcombine.low %v2910_v26, %v713_v6  ;;  %v719_v12 = vcombine.high %v2910_v26, %v713_v6 }
 0x277   : > { %v943_v13 = vrot.slane %v936_v7, %v2927_v48  ;;  %v951_v14 = vrot.slane %v2157_v8, %v2927_v48  ;;  %v959_v15 = vrot.slane %v952_v9, %v2927_v48  ;;  %v967_v16 = vrot.slane %v2158_v10, %v2927_v48 }
 0x278   : > { %v716_v17 = vpop.permute.xlu1 %715  ;;  %v726_v22 = vrot.slane %v718_v11, %v2927_v48  ;;  %v733_v23 = vrot.slane %v719_v12, %v2927_v48 }
 0x279   : > { %v734_v18 = vcombine.low %v710_v59, %v716_v17  ;;  %v735_v19 = vcombine.high %v710_v59, %v716_v17  ;;  %v968_v20 = vcombine.low %v943_v13, %v951_v14  ;;  %v984_v21 = vcombine.low %v959_v15, %v967_v16 }
 0x27a   : > { %v969_v28 = vcombine.high %v943_v13, %v951_v14  ;;  %v985_v29 = vcombine.high %v959_v15, %v967_v16 }
 0x27b   : > { %v742_v24 = vrot.slane %v734_v18, %v2927_v48  ;;  %v749_v25 = vrot.slane %v735_v19, %v2927_v48  ;;  %v976_v26 = vrot.slane %v968_v20, %v2930_v54  ;;  %v992_v27 = vrot.slane %v984_v21, %v2930_v54 }
 0x27c   : > { %v983_v45 = vrot.slane %v969_v28, %v2930_v54  ;;  %v999_v46 = vrot.slane %v985_v29, %v2930_v54  ;;  %v1350_v19 = vand.u32 127, %v723_v40 }
 0x27d   : > { %v750_v30 = vcombine.low %v726_v22, %v742_v24  ;;  %v751_v31 = vcombine.high %v726_v22, %v742_v24  ;;  %v766_v32 = vcombine.low %v733_v23, %v749_v25  ;;  %v767_v33 = vcombine.high %v733_v23, %v749_v25 }
 0x27e   : > { %v1000_v35 = vcombine.low %v976_v26, %v992_v27  ;;  %v1001_v36 = vcombine.high %v976_v26, %v992_v27  ;;  %v1002_v61 = vcombine.low %v983_v45, %v999_v46  ;;  %v1003_v62 = vcombine.high %v983_v45, %v999_v46 }
 0x27f   : > { %v758_v37 = vrot.slane %v750_v30, %v2930_v54  ;;  %v765_v38 = vrot.slane %v751_v31, %v2930_v54  ;;  %v774_v39 = vrot.slane %v766_v32, %v2930_v54  ;;  %v781_v41 = vrot.slane %v767_v33, %v2930_v54 }
 0x280   : > { %v1004_v42 = vpack.c.bf16 %v1000_v35, %v1000_v35  ;;  %v1005_v43 = vpack.c.bf16 %v1001_v36, %v1001_v36  ;;  %v1006_v7 = vpack.c.bf16 %v1002_v61, %v1002_v61  ;;  %v1007_v8 = vpack.c.bf16 %v1003_v62, %v1003_v62 }
 0x281   : > { %v786_v47 = vcombine.low %v758_v37, %v765_v38  ;;  %v2155_v49 = vcombine.high %v758_v37, %v765_v38  ;;  %v802_v50 = vcombine.low %v774_v39, %v781_v41  ;;  %v2156_v51 = vcombine.high %v774_v39, %v781_v41 }
 0x282   : > { %v1163_v52 = vsel %vm1158_vm2, %v1004_v42, 0  ;;  %v1209_v53 = vsel %vm1158_vm2, %v1005_v43, 0  ;;  %v1255_v13 = vsel %vm1158_vm2, %v1006_v7, 0  ;;  %v1301_v14 = vsel %vm1158_vm2, %v1007_v8, 0 }
 0x283   : > { %v793_v55 = vrot.slane %v786_v47, %v2927_v48  ;;  %v801_v56 = vrot.slane %v2155_v49, %v2927_v48  ;;  %v809_v57 = vrot.slane %v802_v50, %v2927_v48  ;;  %v817_v58 = vrot.slane %v2156_v51, %v2927_v48  ;;  %2259 = vmatpush3.bf16.xpose.msra.mxu1 %v1163_v52 }
 0x284   : > { %2265 = vmatpush3.bf16.xpose.msra.mxu0 %v1209_v53  ;;  %2270 = vmatprep.subr.bf16.mxu1 %v2619_v5  ;;  %vm1351_vm3 = vcmp.le.s32.totalorder %v1350_v19, %v2924_v44 }
 0x285   : > { %2276 = vmatprep.subr.bf16.mxu0 %v2619_v5  ;;  %v818_v59 = vcombine.low %v793_v55, %v801_v56  ;;  %v834_v60 = vcombine.low %v809_v57, %v817_v58  ;;  %v819_v63 = vcombine.high %v793_v55, %v801_v56  ;;  %v835_v1 = vcombine.high %v809_v57, %v817_v58 }
 0x287   : > { %v826_v2 = vrot.slane %v818_v59, %v2930_v54  ;;  %v842_v3 = vrot.slane %v834_v60, %v2930_v54  ;;  %v833_v11 = vrot.slane %v819_v63, %v2930_v54  ;;  %v849_v12 = vrot.slane %v835_v1, %v2930_v54 }
 0x289   : > { %v850_v4 = vcombine.low %v826_v2, %v842_v3  ;;  %v851_v6 = vcombine.high %v826_v2, %v842_v3  ;;  %v852_v15 = vcombine.low %v833_v11, %v849_v12  ;;  %v853_v16 = vcombine.high %v833_v11, %v849_v12 }
 0x28b   : > { %v854_v9 = vpack.c.bf16 %v850_v4, %v850_v4  ;;  %v855_v10 = vpack.c.bf16 %v851_v6, %v851_v6  ;;  %v856_v17 = vpack.c.bf16 %v852_v15, %v852_v15  ;;  %v857_v18 = vpack.c.bf16 %v853_v16, %v853_v16 }
 0x28d   : > { %2261 = vmatmul.mubr.msk.bf16.vlgmr.msra.gmra.mrb[0].mxu1 %vm1158_vm2, %v854_v9  ;;  %2267 = vmatmul.mubr.msk.bf16.vlgmr.msra.gmra.mrb[12].mxu0 %vm1158_vm2, %v855_v10 }
 0x28e   : > { %2271 = vmatpush3.bf16.xpose.msra.mxu1 %v1255_v13  ;;  %2277 = vmatpush3.bf16.xpose.msra.mxu0 %v1301_v14 }
 0x28f   : > { %2272 = vmatprep.mubr.msk.bf16.mxu1 %vm2620_vm1, %v2619_v5  ;;  %2278 = vmatprep.mubr.msk.bf16.mxu0 %vm2620_vm1, %v2619_v5 }
 0x290   : > { %2282 = vmatprep.subr.bf16.mxu1 %v2619_v5  ;;  %2288 = vmatprep.subr.bf16.mxu0 %v2619_v5 }
 0x295   : > { %2273 = vmatmul.mubr.msk.bf16.vlgmr.msra.gmra.mrb[4].mxu1 %vm1158_vm2, %v856_v17  ;;  %2279 = vmatmul.mubr.msk.bf16.vlgmr.msra.gmra.mrb[16].mxu0 %vm1158_vm2, %v857_v18 }
 0x296   : > { %2284 = vmatprep.mubr.msk.bf16.mxu1 %vm2620_vm1, %v2619_v5  ;;  %2290 = vmatprep.mubr.msk.bf16.mxu0 %vm2620_vm1, %v2619_v5 }
 0x360   : > { %v1199_v20 = vpop.f32.mrb[0].mxu1  ;;  %v1245_v21 = vpop.f32.mrb[12].mxu0 }
 0x361   : > { %v1343_v22 = vmul.f32 0.17677669, %v1199_v20  ;;  %v1344_v23 = vmul.f32 0.17677669, %v1245_v21  ;;  %v2262_v24 = vpop.f32.mrb[1].mxu1  ;;  %v2268_v25 = vpop.f32.mrb[13].mxu0 }
 0x362   : > { %v1202_v26 = vpop.f32.mrb[2].mxu1  ;;  %v1248_v27 = vpop.f32.mrb[14].mxu0 }
 0x363   : > { %v2263_v28 = vpop.f32.mrb[3].mxu1  ;;  %v2269_v29 = vpop.f32.mrb[15].mxu0  ;;  %v1354_v30 = vsel %vm1351_vm3, %v1343_v22, -1e+30  ;;  %v1355_v31 = vsel %vm1351_vm3, %v1344_v23, -1e+30 }
 0x364   : > { %v1358_v40 = vsel %vm1158_vm2, %v1354_v30, -inf  ;;  %v1361_v32 = vsel %vm1158_vm2, %v1355_v31, -inf }
 0x365   : > { %1359 = vmax.xlane.f32.xlu1 %v1358_v40  ;;  %1362 = vmax.xlane.f32.xlu0 %v1361_v32 }
 0x368   : > { %v1291_v33 = vpop.f32.mrb[4].mxu1  ;;  %v1337_v35 = vpop.f32.mrb[16].mxu0 }
 0x369   : > { %v1345_v36 = vmul.f32 0.17677669, %v1291_v33  ;;  %v1346_v37 = vmul.f32 0.17677669, %v1337_v35  ;;  %v2274_v38 = vpop.f32.mrb[5].mxu1  ;;  %v2280_v39 = vpop.f32.mrb[17].mxu0 }
 0x36a   : > { %v1294_v41 = vpop.f32.mrb[6].mxu1  ;;  %v1340_v42 = vpop.f32.mrb[18].mxu0 }
 0x36b   : > { %v2275_v43 = vpop.f32.mrb[7].mxu1  ;;  %v2281_v45 = vpop.f32.mrb[19].mxu0  ;;  %v1356_v46 = vsel %vm1351_vm3, %v1345_v36, -1e+30  ;;  %v1357_v49 = vsel %vm1351_vm3, %v1346_v37, -1e+30 }
 0x36c   : > { %v1364_v47 = vsel %vm1158_vm2, %v1356_v46, -inf  ;;  %v1367_v50 = vsel %vm1158_vm2, %v1357_v49, -inf }
 0x36d   : > { %1365 = vmax.xlane.f32.xlu1 %v1364_v47 }
 0x371   : > { %1368 = vmax.xlane.f32.xlu1 %v1367_v50 }
 0x382   : > { %1012 = vrot.lane.b32.xlu1 %v2915_v34, %s2623_s15  ;;  %s494_s15 = sand.u32 1, %s2606_s30  }
 0x383   : > { %s2142_s29 = sshll.u32 %s494_s15, 2  ;;  %s2029_s16 = scalar_lea.sflag [#allocation4], %s494_s15 }
 0x3f2   : > { %v1360_v51 = vpop.xlane.xlu1 %1359  ;;  %v1363_v52 = vpop.xlane.xlu0 %1362 }
 0x3f3   : > { %v1370_v53 = vsub.f32 %v1354_v30, %v1360_v51  ;;  %v1371_v55 = vsub.f32 %v1355_v31, %v1363_v52 }
 0x3f5   : > { %v1374_v56 = vmul.f32 1.442695, %v1370_v53  ;;  %v1376_v57 = vmul.f32 1.442695, %v1371_v55 }
 0x3f7   : > { %2442 = vpow2.f32 %v1374_v56 }
 0x3f8   : > { %2444 = vpow2.f32 %v1376_v57 }
 0x3fa   : > { %v1366_v61 = vpop.xlane.xlu1 %1365 }
 0x3fb   : > { %v1372_v63 = vsub.f32 %v1356_v46, %v1366_v61 }
 0x3fd   : > { %v1378_v2 = vmul.f32 1.442695, %v1372_v63 }
 0x3fe   : > { %v1369_v62 = vpop.xlane.xlu1 %1368 }
 0x3ff   : > { %v1373_v1 = vsub.f32 %v1357_v49, %v1369_v62  ;;  %2446 = vpow2.f32 %v1378_v2 }
 0x401   : > { %v3002_v58 = vpop.eup %2442  ;;  %v1380_v3 = vmul.f32 1.442695, %v1373_v1 }
 0x402   : > { %v3004_v59 = vpop.eup %2444  ;;  %v1382_v44 = vsel %vm1158_vm2, %v3002_v58, 0.0  ;;  %v1013_v9 = vpop.permute.xlu1 %1012 }
 0x403   : > { %1383 = vadd.xlane.f32.xlu0 %v1382_v44  ;;  %v1385_v60 = vsel %vm1158_vm2, %v3004_v59, 0.0  ;;  %2448 = vpow2.f32 %v1380_v3  ;;  %v1018_v12 = vcombine.low %v2915_v34, %v1013_v9  ;;  %v1019_v13 = vcombine.high %v2915_v34, %v1013_v9 }
 0x404   : > { %1386 = vadd.xlane.f32.xlu1 %v1385_v60 }
 0x405   : > { %v1026_v18 = vrot.slane %v1018_v12, %v2927_v48  ;;  %v1033_v19 = vrot.slane %v1019_v13, %v2927_v48 }
 0x409   : > { %v3014_v4 = vpop.eup %2446 }
 0x40a   : > { %v1388_v7 = vsel %vm1158_vm2, %v3014_v4, 0.0 }
 0x40d   : > { %v3016_v6 = vpop.eup %2448 }
 0x40e   : > { %v1391_v8 = vsel %vm1158_vm2, %v3016_v6, 0.0 }
 0x415   : > { %1015 = vrot.lane.b32.xlu1 %v2915_v34, %s2621_s26  ;;  %s2629_s26 = smov [#allocation8]  }
 0x419   : > { %1009 = vrot.lane.b32.xlu0 %v2915_v34, %s2622_s21  ;;  %s2548_s21 = sshll.u32 %s2629_s26, 4  ;;  %s2549_s21 = int_to_ptr.vmem [resolvable:$false] %s2548_s21 }
 0x438   : > { %1389 = vadd.xlane.f32.xlu0 %v1388_v7 }
 0x439   : > { %1392 = vadd.xlane.f32.xlu1 %v1391_v8 }
 0x490   : > { %v1384_v10 = vpop.xlane.xlu0 %1383 }
 0x491   : > { %v1387_v11 = vpop.xlane.xlu1 %1386  ;;  %2450 = vrcp.f32 %v1384_v10 }
 0x492   : > { %2452 = vrcp.f32 %v1387_v11 }
 0x494   : > { %v1010_v14 = vpop.permute.xlu0 %1009 }
 0x495   : > { %v1016_v15 = vpop.permute.xlu1 %1015 }
 0x496   : > { %v1034_v16 = vcombine.low %v1010_v14, %v1016_v15  ;;  %v1035_v17 = vcombine.high %v1010_v14, %v1016_v15  ;;  %v2428_v14 = vld [vmem:[%s3200_s6] sm:$0xff]  }
 0x498   : > { %v1042_v20 = vrot.slane %v1034_v16, %v2927_v48  ;;  %v1049_v21 = vrot.slane %v1035_v17, %v2927_v48 }
 0x49a   : > { %v1050_v22 = vcombine.low %v1026_v18, %v1042_v20  ;;  %v1051_v23 = vcombine.high %v1026_v18, %v1042_v20  ;;  %v1066_v24 = vcombine.low %v1033_v19, %v1049_v21  ;;  %v1067_v25 = vcombine.high %v1033_v19, %v1049_v21 }
 0x49b   : > { %v2451_v45 = vpop.eup %2450 }
 0x49c   : > { %v1058_v34 = vrot.slane %v1050_v22, %v2930_v54  ;;  %v1065_v26 = vrot.slane %v1051_v23, %v2930_v54  ;;  %v1074_v27 = vrot.slane %v1066_v24, %v2930_v54  ;;  %v1081_v28 = vrot.slane %v1067_v25, %v2930_v54  ;;  %v2453_v49 = vpop.eup %2452 }
 0x49d   : > { %v1398_v55 = vmul.f32 %v2451_v45, %v3002_v58  ;;  %v1399_v56 = vmul.f32 %v2453_v49, %v3004_v59 }
 0x49e   : > { %v1086_v29 = vcombine.low %v1058_v34, %v1065_v26  ;;  %v2159_v30 = vcombine.high %v1058_v34, %v1065_v26  ;;  %v1102_v31 = vcombine.low %v1074_v27, %v1081_v28  ;;  %v2160_v40 = vcombine.high %v1074_v27, %v1081_v28 }
 0x49f   : > { %v1402_v1 = vpack.c.bf16 %v1398_v55, %v1398_v55  ;;  %v1403_v2 = vpack.c.bf16 %v1399_v56, %v1399_v56 }
 0x4a0   : > { %v1093_v32 = vrot.slane %v1086_v29, %v2927_v48  ;;  %v1101_v33 = vrot.slane %v2159_v30, %v2927_v48  ;;  %v1109_v35 = vrot.slane %v1102_v31, %v2927_v48  ;;  %v1117_v36 = vrot.slane %v2160_v40, %v2927_v48 }
 0x4a2   : > { %v1118_v37 = vcombine.low %v1093_v32, %v1101_v33  ;;  %v1119_v38 = vcombine.high %v1093_v32, %v1101_v33  ;;  %v1134_v39 = vcombine.low %v1109_v35, %v1117_v36  ;;  %v1135_v41 = vcombine.high %v1109_v35, %v1117_v36 }
 0x4a4   : > { %v1126_v42 = vrot.slane %v1118_v37, %v2930_v54  ;;  %v1133_v43 = vrot.slane %v1119_v38, %v2930_v54  ;;  %v1142_v46 = vrot.slane %v1134_v39, %v2930_v54  ;;  %v1149_v47 = vrot.slane %v1135_v41, %v2930_v54  ;;  %v2429_v41 = vld [vmem:[%s3200_s6 + $0x8] sm:$0xff]  }
 0x4a6   : > { %v1150_v50 = vcombine.low %v1126_v42, %v1142_v46  ;;  %v1151_v51 = vcombine.high %v1126_v42, %v1142_v46  ;;  %v1152_v52 = vcombine.low %v1133_v43, %v1149_v47  ;;  %v1153_v53 = vcombine.high %v1133_v43, %v1149_v47 }
 0x4a8   : > { %v1154_v57 = vpack.c.bf16 %v1150_v50, %v1150_v50  ;;  %v1155_v44 = vpack.c.bf16 %v1151_v51, %v1151_v51  ;;  %v1156_v62 = vpack.c.bf16 %v1152_v52, %v1152_v52  ;;  %v1157_v63 = vpack.c.bf16 %v1153_v53, %v1153_v53 }
 0x4aa   : > { %v1411_v60 = vsel %vm1409_vm4, %v1154_v57, 0  ;;  %v1457_v61 = vsel %vm1409_vm4, %v1155_v44, 0  ;;  %v1503_v58 = vsel %vm1409_vm4, %v1156_v62, 0  ;;  %v1549_v59 = vsel %vm1409_vm4, %v1157_v63, 0 }
 0x4ab   : > { %2283 = vmatpush3.bf16.msra.mxu1 %v1411_v60  ;;  %2289 = vmatpush3.bf16.msra.mxu0 %v1457_v61 }
 0x4ac   : > { %2294 = vmatprep.subr.bf16.mxu1 %v2619_v5  ;;  %2300 = vmatprep.subr.bf16.mxu0 %v2619_v5 }
 0x4ae   : > { %2285 = vmatmul.mubr.msk.bf16.vlgmr.msra.gmra.mrb[8].mxu1 %vm1158_vm2, %v1402_v1  ;;  %2291 = vmatmul.mubr.msk.bf16.vlgmr.msra.gmra.mrb[20].mxu0 %vm1158_vm2, %v1403_v2 }
 0x4af   : > { %2295 = vmatpush3.bf16.msra.mxu1 %v1503_v58  ;;  %2301 = vmatpush3.bf16.msra.mxu0 %v1549_v59 }
 0x4b0   : > { %2296 = vmatprep.mubr.msk.bf16.mxu1 %vm2620_vm1, %v2619_v5  ;;  %2302 = vmatprep.mubr.msk.bf16.mxu0 %vm2620_vm1, %v2619_v5 }
 0x4b1   : > { %2306 = vmatprep.subr.bf16.mxu1 %v2619_v5  ;;  %2314 = vmatprep.subr.bf16.mxu0 %v2619_v5 }
 0x4c5   : > { %v1390_v3 = vpop.xlane.xlu0 %1389 }
 0x4c6   : > { %2454 = vrcp.f32 %v1390_v3  ;;  %v1393_v7 = vpop.xlane.xlu1 %1392 }
 0x4c7   : > { %2456 = vrcp.f32 %v1393_v7 }
 0x4d0   : > { %v2455_v8 = vpop.eup %2454 }
 0x4d1   : > { %v2457_v9 = vpop.eup %2456  ;;  %v1400_v10 = vmul.f32 %v2455_v8, %v3014_v4 }
 0x4d2   : > { %v1401_v11 = vmul.f32 %v2457_v9, %v3016_v6 }
 0x4d3   : > { %v1404_v12 = vpack.c.bf16 %v1400_v10, %v1400_v10 }
 0x4d4   : > { %v1405_v13 = vpack.c.bf16 %v1401_v11, %v1401_v11 }
 0x4d5   : > { %2297 = vmatmul.mubr.msk.bf16.vlgmr.msra.gmra.mrb[12].mxu1 %vm1158_vm2, %v1404_v12 }
 0x4d6   : > { %2303 = vmatmul.mubr.msk.bf16.vlgmr.msra.gmra.mrb[24].mxu0 %vm1158_vm2, %v1405_v13  ;;  %2310 = vmatprep.mubr.msk.bf16.mxu1 %vm2620_vm1, %v2619_v5  ;;  %v2171_v13 = vld [vmem:[#allocation2] ss:$0 sm:$0xff] }
 0x4d7   : > { %2318 = vmatprep.mubr.msk.bf16.mxu0 %vm2620_vm1, %v2619_v5  ;;  %2307 = vmatpush3.bf16.msra.mxu1 %v2428_v14 }
 0x4d8   : > { %2308 = vmatprep.subr.bf16.mxu1 %v2619_v5 }
 0x4db   : > { %2309 = vmatpush3.bf16.msra.mxu1 %v2429_v41 }
 0x4dc   : > { %2322 = vmatprep.subr.bf16.mxu1 %v2619_v5 }
 0x581   : > { %v1447_v4 = vpop.f32.mrb[8].mxu1  ;;  %v1493_v6 = vpop.f32.mrb[20].mxu0 }
 0x582   : > { %v2286_v15 = vpop.f32.mrb[9].mxu1  ;;  %v2292_v16 = vpop.f32.mrb[21].mxu0 }
 0x583   : > { %v1450_v17 = vpop.f32.mrb[10].mxu1  ;;  %v1496_v18 = vpop.f32.mrb[22].mxu0 }
 0x584   : > { %v2287_v19 = vpop.f32.mrb[11].mxu1  ;;  %v2293_v20 = vpop.f32.mrb[23].mxu0 }
 0x5a8   : > { %v1539_v21 = vpop.f32.mrb[12].mxu1 }
 0x5a9   : > { %v1591_v22 = vcombine.low %v1447_v4, %v1539_v21  ;;  %v1592_v23 = vcombine.high %v1447_v4, %v1539_v21  ;;  %v1585_v24 = vpop.f32.mrb[24].mxu0  ;;  %v2298_v25 = vpop.f32.mrb[13].mxu1  ;;  %v2430_v21 = vld [vmem:[%s3204_s10] sm:$0xff]  }
 0x5aa   : > { %v1607_v34 = vcombine.low %v1493_v6, %v1585_v24  ;;  %v1608_v26 = vcombine.high %v1493_v6, %v1585_v24  ;;  %v2304_v27 = vpop.f32.mrb[25].mxu0  ;;  %v1542_v28 = vpop.f32.mrb[14].mxu1  ;;  %2315 = vmatpush3.bf16.msra.mxu0 %v2430_v21  ;;  %v2434_v24 = vld [vmem:[%s3206_s12 + $0x10] sm:$0xff]   ;;  %v2435_v25 = vld [vmem:[%s3206_s12 + $0x18] sm:$0xff]  }
 0x5ab   : > { %v1599_v29 = vrot.slane %v1591_v22, %v2927_v48  ;;  %v1606_v30 = vrot.slane %v1592_v23, %v2927_v48  ;;  %v1588_v31 = vpop.f32.mrb[26].mxu0  ;;  %v2299_v40 = vpop.f32.mrb[15].mxu1  ;;  %2316 = vmatprep.subr.bf16.mxu0 %v2619_v5  ;;  %v2432_v22 = vld [vmem:[%s3206_s12] sm:$0xff]   ;;  %v2433_v23 = vld [vmem:[%s3206_s12 + $0x8] sm:$0xff]  }
 0x5ac   : > { %v1615_v32 = vrot.slane %v1607_v34, %v2927_v48  ;;  %v1622_v33 = vrot.slane %v1608_v26, %v2927_v48  ;;  %v2305_v35 = vpop.f32.mrb[27].mxu0  ;;  %v2436_v34 = vld [vmem:[%s3206_s12 + $0x20] sm:$0xff]   ;;  %v2437_v26 = vld [vmem:[%s3206_s12 + $0x28] sm:$0xff]  }
 0x5ae   : > { %v1623_v36 = vcombine.low %v1599_v29, %v1615_v32  ;;  %v1624_v37 = vcombine.high %v1599_v29, %v1615_v32  ;;  %v1639_v38 = vcombine.low %v1606_v30, %v1622_v33  ;;  %v1640_v39 = vcombine.high %v1606_v30, %v1622_v33 }
 0x5b0   : > { %v1631_v42 = vrot.slane %v1623_v36, %v2930_v54  ;;  %v1638_v43 = vrot.slane %v1624_v37, %v2930_v54  ;;  %v1647_v45 = vrot.slane %v1639_v38, %v2930_v54  ;;  %v1654_v46 = vrot.slane %v1640_v39, %v2930_v54  ;;  %v2175_v36 = vld [vmem:[#allocation5] ss:$0 sm:$0xff]  ;;  %v2176_v38 = vld [vmem:[#allocation7] ss:$0 sm:$0xff] }
 0x5b2   : > { %v1659_v47 = vcombine.low %v1631_v42, %v1638_v43  ;;  %v2169_v49 = vcombine.high %v1631_v42, %v1638_v43  ;;  %v1675_v50 = vcombine.low %v1647_v45, %v1654_v46  ;;  %v2170_v51 = vcombine.high %v1647_v45, %v1654_v46  ;;  %v2438_v43 = vld [vmem:[%s3206_s12 + $0x30] sm:$0xff]   ;;  %v2439_v45 = vld [vmem:[%s3206_s12 + $0x38] sm:$0xff]   ;;  %v2177_v46 = vld [vmem:[%s3205_s11] ss:$0 sm:$0xff] }
 0x5b4   : > { %v1666_v52 = vrot.slane %v1659_v47, %v2927_v48  ;;  %v1674_v53 = vrot.slane %v2169_v49, %v2927_v48  ;;  %v1682_v55 = vrot.slane %v1675_v50, %v2927_v48  ;;  %v1690_v56 = vrot.slane %v2170_v51, %v2927_v48 }
 0x5b6   : > { %v1692_v57 = vcombine.high %v1666_v52, %v1674_v53  ;;  %v1708_v44 = vcombine.high %v1682_v55, %v1690_v56  ;;  %v1691_v60 = vcombine.low %v1666_v52, %v1674_v53  ;;  %v1707_v61 = vcombine.low %v1682_v55, %v1690_v56 }
 0x5b8   : > { %v1706_v62 = vrot.slane %v1692_v57, %v2930_v54  ;;  %v1722_v63 = vrot.slane %v1708_v44, %v2930_v54  ;;  %v1699_v1 = vrot.slane %v1691_v60, %v2930_v54  ;;  %v1715_v2 = vrot.slane %v1707_v61, %v2930_v54 }
 0x5ba   : > { %v1725_v58 = vcombine.low %v1706_v62, %v1722_v63  ;;  %v1724_v59 = vcombine.high %v1699_v1, %v1715_v2  ;;  %v1726_v3 = vcombine.high %v1706_v62, %v1722_v63  ;;  %v1723_v7 = vcombine.low %v1699_v1, %v1715_v2 }
 0x5bc   : > { %1732 = vrot.lane.b32.xlu1 %v1725_v58, %s2626_s23  ;;  %1728 = vrot.lane.b32.xlu0 %v1724_v59, %s2627_s19  ;;  %s2191_s23 = sshll.u32 %s2726_s17, 6  ;;  %s496_s19 = scalar_lea.vmem [#allocation8], %s2142_s29 }
 0x5bd   : > { %s3152_s24 = scalar_lea.hbm %s3240_s25, %s2191_s23  ;;  %s2550_s29 = scalar_lea.vmem %s2549_s21, 128 }
 0x5c0   : > { %1736 = vrot.lane.b32.xlu0 %v1726_v3, %s2628_s20  ;;  %s2042_s20 = sshll.u32 %s496_s19, 4  ;;  %s3154_s20 = int_to_ptr.vmem [resolvable:$true] %s2042_s20 }
 0x5c1   : > { %s2544_s17 = scalar_lea.vmem %s3154_s20, 64  ;;  %p2551_p4 = scmp.lt.s32.totalorder %s3154_s20, %s2549_s21 }
 0x5c2   : > { %p2545_p12 = scmp.ne.s32.totalorder %s3154_s20, %s2544_s17  ;;  %p2552_p7 = scmp.lt.s32.totalorder %s2550_s29, %s2544_s17 }
 0x5c4   : > { %p2546_p2 = pnand %p2545_p12, %p3241_p10  ;;  %p2553_p8 = por %p2552_p7, %p2551_p4 }
 0x5c6   : > { %p2547_p3 = pneg %p2546_p2 }
 0x5c8   : > { %p2554_p11 = pnand %p2553_p8, %p2547_p3 }
 0x62e   : > { %v1729_v48 = vpop.permute.xlu0 %1728  ;;  %v1733_v8 = vpop.permute.xlu1 %1732 }
 0x62f   : > { %v1739_v9 = vsel %vm1158_vm2, %v1723_v7, %v1729_v48 }
 0x630   : > { %v1741_v11 = vsel %vm1740_vm5, %v1739_v9, %v1733_v8 }
 0x632   : > { %v1737_v10 = vpop.permute.xlu0 %1736 }
 0x633   : > { %v1743_v12 = vsel %vm1742_vm6, %v1741_v11, %v1737_v10 }
 0x634   : > { %v1744_v54 = vpack.c.bf16 %v1743_v12, %v1743_v12 }
 0x636   : > { %2311 = vmatmul.mubr.msk.bf16.vlgmr.msra.gmra.mrb[16].mxu1 %vm503_vm0, %v1744_v54 }
 0x637   : > { %2338 = vmatprep.mubr.msk.bf16.mxu1 %vm2620_vm1, %v2619_v5  ;;  %2323 = vmatpush3.bf16.msra.mxu1 %v2432_v22 }
 0x638   : > { %2324 = vmatprep.subr.bf16.mxu1 %v2619_v5 }
 0x63b   : > { %2325 = vmatpush3.bf16.msra.mxu1 %v2433_v23 }
 0x63c   : > { %2326 = vmatprep.subr.bf16.mxu1 %v2619_v5 }
 0x63f   : > { %2327 = vmatpush3.bf16.msra.mxu1 %v2434_v24 }
 0x640   : > { %2328 = vmatprep.subr.bf16.mxu1 %v2619_v5 }
 0x643   : > { %2329 = vmatpush3.bf16.msra.mxu1 %v2435_v25 }
 0x644   : > { %2330 = vmatprep.subr.bf16.mxu1 %v2619_v5 }
 0x647   : > { %2331 = vmatpush3.bf16.msra.mxu1 %v2436_v34 }
 0x648   : > { %2332 = vmatprep.subr.bf16.mxu1 %v2619_v5 }
 0x64b   : > { %2333 = vmatpush3.bf16.msra.mxu1 %v2437_v26 }
 0x64c   : > { %2334 = vmatprep.subr.bf16.mxu1 %v2619_v5 }
 0x64f   : > { %2335 = vmatpush3.bf16.msra.mxu1 %v2438_v43 }
 0x650   : > { %2336 = vmatprep.subr.bf16.mxu1 %v2619_v5  ;;  %v2181_v5 = vld [vmem:[%s3207_s13] ss:$0 sm:$0xff] }
 0x653   : > { %2337 = vmatpush3.bf16.msra.mxu1 %v2439_v45 }
 0x709   : > { %v1805_v14 = vpop.f32.mrb[16].mxu1 }
 0x70a   : > { %v1806_v4 = vadd.f32 %v2171_v13, %v1805_v14  ;;  %v2312_v6 = vpop.f32.mrb[17].mxu1 }
 0x70b   : > { %v1808_v15 = vpop.f32.mrb[18].mxu1 }
 0x70c   : > { %v3093_v16 = vadd.f32 %v1806_v4, %v2857_v0  ;;  %v2313_v17 = vpop.f32.mrb[19].mxu1  ;;  %v2431_v0 = vld [vmem:[%s3204_s10 + $0x8] sm:$0xff]  }
 0x70d   : > { %2317 = vmatpush3.bf16.msra.mxu0 %v2431_v0 }
 0x70e   : > { %v1813_v18 = vsel %vm503_vm0, %v3093_v16, 0.0  ;;  %v1817_v19 = vmul.f32 %v3093_v16, %v3093_v16 }
 0x70f   : > { %1814 = vadd.xlane.f32.xlu1 %v1813_v18 }
 0x710   : > { %v1818_v20 = vsel %vm503_vm0, %v1817_v19, 0.0 }
 0x711   : > { %1819 = vadd.xlane.f32.xlu0 %v1818_v20 }
 0x79c   : > { %v1815_v27 = vpop.xlane.xlu1 %1814 }
 0x79d   : > { %v1816_v28 = vmul.f32 0.03125, %v1815_v27 }
 0x79e   : > { %v1820_v29 = vpop.xlane.xlu0 %1819 }
 0x79f   : > { %v1822_v30 = vmul.f32 %v1816_v28, %v1816_v28  ;;  %v1821_v31 = vmul.f32 0.03125, %v1820_v29  ;;  %v1824_v33 = vsub.f32 %v3093_v16, %v1816_v28 }
 0x7a1   : > { %v1823_v40 = vsub.f32 %v1821_v31, %v1822_v30 }
 0x7a3   : > { %v1825_v32 = vadd.f32 1e-05, %v1823_v40 }
 0x7a5   : > { %2458 = vrsqrt.f32 %v1825_v32 }
 0x7af   : > { %v2459_v35 = vpop.eup %2458 }
 0x7b0   : > { %v1827_v37 = vmul.f32 %v2459_v35, %v1824_v33 }
 0x7b2   : > { %v1835_v39 = vmul.f32 %v2175_v36, %v1827_v37 }
 0x7b4   : > { %v1843_v41 = vadd.f32 %v2176_v38, %v1835_v39 }
 0x7b6   : > { %v1844_v42 = vpack.c.bf16 %v1843_v41, %v1843_v41 }
 0x7b8   : > { %2319 = vmatmul.mubr.msk.bf16.vlgmr.msra.gmra.mrb[28].mxu0 %vm503_vm0, %v1844_v42 }
 0x88b   : > { %v1905_v47 = vpop.f32.mrb[28].mxu0 }
 0x88c   : > { %v1906_v49 = vadd.f32 %v2177_v46, %v1905_v47  ;;  %v2320_v50 = vpop.f32.mrb[29].mxu0 }
 0x88d   : > { %v1908_v51 = vpop.f32.mrb[30].mxu0 }
 0x88e   : > { %v1911_v52 = vmax.f32 %v1906_v49, 0.0  ;;  %v2321_v53 = vpop.f32.mrb[31].mxu0 }
 0x890   : > { %v1912_v55 = vpack.c.bf16 %v1911_v52, %v1911_v52 }
 0x892   : > { %2339 = vmatmul.mubr.bf16.vlgmr.msra.gmra.mrb[20].mxu1 %v1912_v55 }
 0x965   : > { %v2018_v56 = vpop.f32.mrb[20].mxu1 }
 0x966   : > { %v2019_v57 = vadd.f32 %v2181_v5, %v2018_v56  ;;  %v2340_v44 = vpop.f32.mrb[21].mxu1 }
 0x967   : > { %v2021_v60 = vpop.f32.mrb[22].mxu1 }
 0x968   : > { %v2024_v61 = vadd.f32 %v2019_v57, %v3093_v16  ;;  %v2341_v62 = vpop.f32.mrb[23].mxu1 }
 0x96a   : > { %v2025_v63 = vpack.c.bf16 %v2024_v61, %v2024_v61 }
 0x96c   : > { %2027 = vst.msk [vmem:[%s496_s19] sm:$0xf] %vm2026_vm7, %v2025_v63 }
 0x96d   : > { %2557 = shalt.err (!%p2554_p11)
}
 0x96e   : > { %s2558_s15 = scalar_lea.hbm %s3152_s24, 64  ;;  %s2562_s23 = scalar_lea.hbm %s3240_s25, 128 }
 0x96f   : > { %p2559_p13 = scmp.ne.s32.totalorder %s3152_s24, %s2558_s15  ;;  %p2563_p6 = scmp.lt.u32.totalorder %s3152_s24, %s3240_s25 }
 0x970   : > { %p2564_p5 = scmp.lt.u32.totalorder %s2562_s23, %s2558_s15  ;;  %p2566_p12 = scmp.lt.u32.totalorder %s2558_s15, %s3152_s24 }
 0x971   : > { %p2560_p0 = pnand %p2559_p13, %p3241_p10 }
 0x972   : > { %p2565_p9 = por %p2564_p5, %p2563_p6 }
 0x973   : > { %p2561_p1 = pneg %p2560_p0 }
 0x974   : > { %p2567_p2 = por %p2566_p12, %p2565_p9 }
 0x976   : > { %p2568_p3 = pnand %p2567_p2, %p2561_p1 }
 0x978   : > { %2571 = shalt.err (!%p2568_p3)
}
 0x979   : > { %2354 = dma.vmem_to_hbm [thread:$0]  (%p3241_p10), %s3154_s20, 64, %s3152_s24, %s2029_s16  }
 0x97a PF: > { %s3242_s28 = sld [smem:[#allocation14_spill]]  ;;  %s3243_s17 = sld [smem:[#allocation12_spill]] }
 0x97b   : > { %s3244_s26 = sld [smem:[#allocation18_spill]] }
 0x980   : > { %p2376_p4 = scmp.ge.s32.totalorder %s3242_s28, 2  ;;  %s2054_s21 = sand.u32 1, %s3243_s17  }
 0x981   : > { %p3245_p7 = scmp.ne.s32.totalorder %s3244_s26, 0  ;;  %s2055_s29 = scalar_lea.sflag [#allocation4], %s2054_s21 }
 0x983   : > { %p2367_p8 = pnand %p2376_p4, %p3245_p7 }
 0x985   : > { %2597 = dma.done.wait (!%p2367_p8), %s2055_s29, 64  }
 0x986   : > { %2599 = vsyncadd (!%p2367_p8), %s2055_s29, 4294967232  ;;  %s3246_s16 = sld [smem:[#allocation15_spill]]  ;;  %s3247_s15 = sld [smem:[#allocation13_spill]] }
 0x987   : > { %s3248_s27 = sld [smem:[#allocation16_spill]]  ;;  %s3249_s29 = smov %s2606_s30 }
 0x98c   : > { %p26_p11 = scmp.ge.s32.totalorder %s3246_s16, 4   ;;  %s3250_s30 = smov %s3247_s15 }
 0x98d   : > { %s3251_s15 = smov %s3248_s27 }
 0x98e   :  { %28 = sbr.rel (!%p26_p11) target bundleno = 7 (0x7), region = 124 }
 0x995   :  { %2060 = vsyncpa [#allocation3], 1 }
 0x996   :  { %2062 = vsyncpa [#allocation3 + $0x1], 1 }
 0x997   :  { %2063 = vsyncpa [#allocation6], 1 }
 0x998   :  { %2064 = vsyncpa [#allocation4], 1 }
 0x999   :  { %2066 = vsyncpa [#allocation4 + $0x1], 1 }

</bundles_post_ra>
